<compile_context>
chip_gen: v5e
topology: v5e:2x2
jax: 0.10.0
libtpu: 0.0.40
codegen_flags: <defaults>
</compile_context>

<pallas_src>
import jax
import jax.numpy as jnp
from jax.experimental import pallas as pl
from jax.experimental.pallas import tpu as pltpu

_LANES = 128


def _logreg_kernel(x_ref, w_ref, b_ref, o_ref):
    # x_ref: (r_blk, K) f32 VMEM -- K = G*F lanes; G batch rows per vector row
    # w_ref: (K, G)     f32 VMEM -- block-diagonal weight, resident (constant idx map)
    # b_ref: (1, 1)     f32 VMEM -- bias
    # o_ref: (r_blk, G) f32 VMEM -- sigmoid(logits), G logits per vector row
    logits = jnp.dot(x_ref[...], w_ref[...], preferred_element_type=jnp.float32)
    logits = logits + b_ref[0, 0]
    # Exact sigmoid: exp -> EUP, divide exact; fully hidden under DMA.
    o_ref[...] = 1.0 / (1.0 + jnp.exp(-logits))


def model_forward(x, weight, bias, *, block_rows=65536):
    """sigmoid(x @ weight.T + bias).  x: [N, F], weight: [1, F], bias: [1] -> [N, 1]."""
    N, F = x.shape
    x = x.astype(jnp.float32)
    weight = weight.astype(jnp.float32).reshape(1, F)
    bias2 = bias.astype(jnp.float32).reshape(1, 1)

    # Pack G batch rows per 128-lane vector row when F divides 128 (lane-dense).
    G = _LANES // F if (F <= _LANES and _LANES % F == 0) else 1
    K = G * F

    n_pack = ((N + G - 1) // G) * G
    if n_pack != N:
        # TODO(synk): only hit when N % G != 0; a masked epilogue would avoid
        # this full-copy pad entirely.
        x = jnp.pad(x, ((0, n_pack - N), (0, 0)))
    rows = n_pack // G
    x2 = x.reshape(rows, K)  # free row-major reshape (metadata only)

    # Block-diagonal weight: w_seg[g*F + f, g] = weight[0, f].
    w_seg = jnp.kron(jnp.eye(G, dtype=jnp.float32), weight.reshape(F, 1))  # (K, G)

    # Packed rows per grid step: ~8 MiB of x per block (so double-buffering fits
    # comfortably in every generation's scoped VMEM, incl. v7x's 64 MiB), at
    # least 2 grid steps when possible, multiple of 8 sublanes.
    r_blk = max(8, block_rows // G)
    r_blk = min(r_blk, max(8, (8 << 20) // (K * 4)))   # ~8 MiB block cap
    r_blk = min(r_blk, max(8, (rows + 1) // 2))        # keep >= 2 grid steps
    r_blk = ((r_blk + 7) // 8) * 8
    if rows <= r_blk:
        r_blk = rows  # single block equal to the full array is always legal
    grid = pl.cdiv(rows, r_blk)

    out = pl.pallas_call(
        _logreg_kernel,
        out_shape=jax.ShapeDtypeStruct((rows, G), jnp.float32),
        grid=(grid,),
        in_specs=[
            pl.BlockSpec((r_blk, K), lambda i: (i, 0)),
            pl.BlockSpec((K, G), lambda i: (0, 0)),   # resident weight
            pl.BlockSpec((1, 1), lambda i: (0, 0)),   # resident bias
        ],
        out_specs=pl.BlockSpec((r_blk, G), lambda i: (i, 0)),
        compiler_params=pltpu.CompilerParams(
            dimension_semantics=("parallel",),
            vmem_limit_bytes=40 * 1024 * 1024,
        ),
    )(x2, w_seg, bias2)

    # Free row-major reshape back to one prediction per batch row.
    return out.reshape(n_pack, 1)[:N]


if __name__ == "__main__":
    N_FEATURES = 32
    BATCH = 8

    key = jax.random.PRNGKey(0)
    kx, kw, kb = jax.random.split(key, 3)

    # Deterministic synthetic parameters (nn.Linear(n_input_features, 1) shapes).
    x = jax.random.normal(kx, (BATCH, N_FEATURES), dtype=jnp.float32)
    weight = jax.random.normal(kw, (1, N_FEATURES), dtype=jnp.float32) * 0.1
    bias = jax.random.normal(kb, (1,), dtype=jnp.float32) * 0.1

    y = model_forward(x, weight, bias)
    jax.block_until_ready(y)
    y_ref = jax.nn.sigmoid(x @ weight.T + bias)
    assert y.shape == (BATCH, 1)
    assert jnp.allclose(y, y_ref, atol=1e-3), "mismatch vs reference (small batch)"

    # Exercise the multi-step pipelined grid with a ragged last block (no pad).
    x2 = jax.random.normal(kx, (2500, N_FEATURES), dtype=jnp.float32)
    y2 = model_forward(x2, weight, bias, block_rows=1024)
    jax.block_until_ready(y2)
    y2_ref = jax.nn.sigmoid(x2 @ weight.T + bias)
    assert y2.shape == (2500, 1)
    assert jnp.allclose(y2, y2_ref, atol=1e-3), "mismatch vs reference (tiled batch)"

    print("KERNEL_OK")
</pallas_src>

<mosaic_0001>
module attributes {stable_mosaic.version = 11 : i64} {
  func.func @_logreg_kernel(%arg0: i32, %arg1: memref<2x128xf32, #tpu.memory_space<vmem>>, %arg2: memref<128x4xf32, #tpu.memory_space<vmem>>, %arg3: memref<1x1xf32, #tpu.memory_space<vmem>>, %arg4: memref<2x4xf32, #tpu.memory_space<vmem>>) attributes {dimension_semantics = [#tpu.dimension_semantics<parallel>], iteration_bounds = array<i64: 1>, scalar_prefetch = 0 : i64, scratch_operands = 0 : i64, tpu.core_type = #tpu.core_type<tc>, window_params = [{transform_indices = @transform_0, window_bounds = array<i64: 2, 128>}, {pipeline_mode = #tpu.pipeline_mode<synchronous>, transform_indices = @transform_1, window_bounds = array<i64: 128, 4>}, {pipeline_mode = #tpu.pipeline_mode<synchronous>, transform_indices = @transform_2, window_bounds = array<i64: 1, 1>}, {transform_indices = @transform_3, window_bounds = array<i64: 2, 4>}]} {
    %c0 = arith.constant 0 : index
    %c0_0 = arith.constant 0 : index
    %0 = vector.load %arg1[%c0, %c0_0] : memref<2x128xf32, #tpu.memory_space<vmem>>, vector<2x128xf32>
    %c0_1 = arith.constant 0 : index
    %c0_2 = arith.constant 0 : index
    %1 = vector.load %arg2[%c0_1, %c0_2] : memref<128x4xf32, #tpu.memory_space<vmem>>, vector<128x4xf32>
    %cst = arith.constant dense<0.000000e+00> : vector<2x4xf32>
    %2 = tpu.matmul %0, %1, %cst {dimension_numbers = #tpu.dot_dimension_numbers<[1], [0], [0], [1], [0, 0, 1, 1], [], []>} : vector<2x128xf32>, vector<128x4xf32>, vector<2x4xf32> -> vector<2x4xf32>
    %c0_3 = arith.constant 0 : index
    %c0_4 = arith.constant 0 : index
    %3 = vector.load %arg3[%c0_3, %c0_4] : memref<1x1xf32, #tpu.memory_space<vmem>>, vector<1x1xf32>
    %4 = vector.extract %3[0, 0] : f32 from vector<1x1xf32>
    %5 = vector.broadcast %4 : f32 to vector<2x4xf32>
    %6 = arith.addf %2, %5 : vector<2x4xf32>
    %cst_5 = arith.constant 0.000000e+00 : f32
    %7 = vector.broadcast %cst_5 : f32 to vector<2x4xf32>
    %8 = arith.subf %7, %6 : vector<2x4xf32>
    %9 = math.exp %8 : vector<2x4xf32>
    %cst_6 = arith.constant 1.000000e+00 : f32
    %10 = vector.broadcast %cst_6 : f32 to vector<2x4xf32>
    %11 = arith.addf %10, %9 : vector<2x4xf32>
    %cst_7 = arith.constant 1.000000e+00 : f32
    %12 = vector.broadcast %cst_7 : f32 to vector<2x4xf32>
    %13 = arith.divf %12, %11 : vector<2x4xf32>
    %c0_8 = arith.constant 0 : index
    %c0_9 = arith.constant 0 : index
    %14 = vector.load %arg4[%c0_8, %c0_9] : memref<2x4xf32, #tpu.memory_space<vmem>>, vector<2x4xf32>
    tpu.vector_store %arg4[%c0_8, %c0_9], %13 {strides = array<i32>} : memref<2x4xf32, #tpu.memory_space<vmem>>, vector<2x4xf32>,
    return
  }
  func.func @transform_0(%arg0: i32) -> (i32, i32) {
    %c0_i32 = arith.constant 0 : i32
    %c0_i32_0 = arith.constant 0 : i32
    return %arg0, %c0_i32 : i32, i32
  }
  func.func @transform_1(%arg0: i32) -> (i32, i32) {
    %c0_i32 = arith.constant 0 : i32
    %c0_i32_0 = arith.constant 0 : i32
    %c0_i32_1 = arith.constant 0 : i32
    return %c0_i32, %c0_i32_0 : i32, i32
  }
  func.func @transform_2(%arg0: i32) -> (i32, i32) {
    %c0_i32 = arith.constant 0 : i32
    %c0_i32_0 = arith.constant 0 : i32
    %c0_i32_1 = arith.constant 0 : i32
    return %c0_i32, %c0_i32_0 : i32, i32
  }
  func.func @transform_3(%arg0: i32) -> (i32, i32) {
    %c0_i32 = arith.constant 0 : i32
    %c0_i32_0 = arith.constant 0 : i32
    return %arg0, %c0_i32 : i32, i32
  }
}

</mosaic_0001>

<bundles_post_ra>
// kernel: tpu_custom_call.1
= control target key start
LH: loop header
LB: loop body
LE: loop exit
PB: predicated region body
PF: predicated region fallthrough
CT: control target
= control target key end

     0   :  { %s205_s0 = inlined_call_operand.vmem [shape: f32[2,128], index: 0, kind: input, shape index: {}]   ;;  %s206_s1 = inlined_call_operand.vmem [shape: f32[128,4], index: 1, kind: input, shape index: {}]   ;;  %s207_s2 = inlined_call_operand.<no memory space> [shape: f32[1,1], index: 2, kind: input, shape index: {}]   ;;  %s208_s3 = inlined_call_operand.hbm [shape: f32[2,4], index: 3, kind: output, shape index: {}]  }
   0x1   :  { %v8_v0 = vstv %s207_s2 }
   0x2   :  { %9 = vst [vmem:[#allocation2] sm:$0x1] %v8_v0 }
   0x3   :  { %v33_v1 = vld [vmem:[%s206_s1 + $0x78] sm:$0xff]  ;;  %v32_v2 = vld [vmem:[%s206_s1 + $0x70] sm:$0xff]  ;;  %v31_v3 = vld [vmem:[%s206_s1 + $0x68] sm:$0xff] }
   0x4   :  { %37 = vmatpush.msra.mxu0 %v33_v1  ;;  %v30_v4 = vld [vmem:[%s206_s1 + $0x60] sm:$0xff]  ;;  %v29_v6 = vld [vmem:[%s206_s1 + $0x58] sm:$0xff] }
   0x6   :  { %38 = vmatpush.msra.mxu0 %v32_v2 }
   0x8   :  { %39 = vmatpush.msra.mxu0 %v31_v3 }
   0x9   :  { %v34_v5 = vld [vmem:[#allocation2] sm:$0x1] }
   0xa   :  { %94 = vpush %v34_v5 }
   0xb   :  { %10 = vsyncpa [#allocation4], 0  ;;  %40 = vmatpush.msra.mxu0 %v30_v4  ;;  %v28_v7 = vld [vmem:[%s206_s1 + $0x50] sm:$0xff]  ;;  %v27_v8 = vld [vmem:[%s206_s1 + $0x48] sm:$0xff]  ;;  %s85_s22 = sshll.u32 %s208_s3, 4  ;;  %vm76_vm3 = vcmask 25600   ;;  %s86_s22 = int_to_ptr.hbm [resolvable:$true] %s85_s22 }
   0xc   :  { %v26_v9 = vld [vmem:[%s206_s1 + $0x40] sm:$0xff]  ;;  %v25_v10 = vld [vmem:[%s206_s1 + $0x38] sm:$0xff]  ;;  %v24_v11 = vld [vmem:[%s206_s1 + $0x30] sm:$0xff] }
   0xd   :  { %41 = vmatpush.msra.mxu0 %v29_v6  ;;  %v23_v12 = vld [vmem:[%s206_s1 + $0x28] sm:$0xff]  ;;  %v22_v13 = vld [vmem:[%s206_s1 + $0x20] sm:$0xff]  ;;  %v21_v14 = vld [vmem:[%s206_s1 + $0x18] sm:$0xff] }
   0xe   :  { %v20_v15 = vld [vmem:[%s206_s1 + $0x10] sm:$0xff]  ;;  %v19_v16 = vld [vmem:[%s206_s1 + $0x8] sm:$0xff]  ;;  %v18_v17 = vld [vmem:[%s206_s1] sm:$0xff] }
   0xf   :  { %42 = vmatpush.msra.mxu0 %v28_v7  ;;  %v17_v18 = vld [vmem:[%s205_s0] sm:$0x3]  ;;  %s127_s0 = smov [#allocation3]  }
  0x10   :  { %s83_s1 = sshll.u32 %s127_s0, 4  ;;  %s84_s1 = int_to_ptr.vmem [resolvable:$true] %s83_s1 }
  0x11   :  { %43 = vmatpush.msra.mxu0 %v27_v8 }
  0x13   :  { %44 = vmatpush.msra.mxu0 %v26_v9 }
  0x15   :  { %45 = vmatpush.msra.mxu0 %v25_v10 }
  0x17   :  { %46 = vmatpush.msra.mxu0 %v24_v11 }
  0x19   :  { %47 = vmatpush.msra.mxu0 %v23_v12 }
  0x1b   :  { %48 = vmatpush.msra.mxu0 %v22_v13 }
  0x1d   :  { %49 = vmatpush.msra.mxu0 %v21_v14 }
  0x1f   :  { %50 = vmatpush.msra.mxu0 %v20_v15 }
  0x21   :  { %51 = vmatpush.msra.mxu0 %v19_v16 }
  0x23   :  { %52 = vmatpush.msra.mxu0 %v18_v17 }
  0x24   :  { %53 = vmatmul.f32.vlgmr.msra.gmra.mxu0 %v17_v18 }
  0x3b   :  { %s95_s20 = spop %94 }
  0x3c   :  { %v36_v19 = vstv %s95_s20 }
  0xa1   :  { %v54_v20 = vpop.f32.mrf.mxu0 }
  0xa2   :  { %v55_v21 = vadd.f32 %v54_v20, %v36_v19 }
  0xa4   :  { %v57_v22 = vsub.f32 0.0, %v55_v21 }
  0xa6   :  { %v58_v23 = vmul.f32 1.442695, %v57_v22 }
  0xa8   :  { %97 = vpow2.f32 %v58_v23 }
  0xae   :  { %v98_v24 = vpop.eup %97 }
  0xaf   :  { %v60_v25 = vadd.f32 1.0, %v98_v24 }
  0xb1   :  { %99 = vrcp.f32 %v60_v25  ;;  %v72_v29 = vand.u32 2147483648, %v60_v25  ;;  %v70_v31 = vand.u32 2147483647, %v60_v25  ;;  %vm66_vm1 = vweird.f32 %v60_v25 }
  0xb3   :  { %v73_v33 = vor.u32 1.1754944e-38, %v72_v29  ;;  %vm71_vm4 = vcmp.eq.f32.partialorder %v70_v31, 8.507059e+37 }
  0xb7   :  { %v100_v26 = vpop.eup %99 }
  0xb8   :  { %v62_v27 = vmul.f32 %v100_v26, %v60_v25  ;;  %vm67_vm0 = vweird.f32 %v100_v26 }
  0xb9   :  { %vm68_vm2 = vmor %vm66_vm1, %vm67_vm0 }
  0xba   :  { %v63_v28 = vsub.f32 1.0, %v62_v27 }
  0xbc   :  { %v64_v30 = vmul.f32 %v100_v26, %v63_v28 }
  0xbe   :  { %v65_v32 = vadd.f32 %v100_v26, %v64_v30 }
  0xc0   :  { %v69_v34 = vsel %vm68_vm2, %v100_v26, %v65_v32 }
  0xc1   :  { %v74_v35 = vsel %vm71_vm4, %v73_v33, %v69_v34 }
  0xc2   :  { %77 = vst.msk [vmem:[#allocation3] sm:$0x3] %vm76_vm3, %v74_v35 }
  0xc3   :  { %88 = dma.vmem_to_hbm [thread:$0]  %s84_s1, 32, %s86_s22, [#allocation4]  }
  0xc4   :  { %125 = dma.done.wait [#allocation4], 32  }
  0xc5   :  { %126 = vsyncadd [#allocation4], 4294967264 }
  0xc6   :  { %93 = vsyncpa [#allocation4], 1 }

</bundles_post_ra>
